<compile_context>
chip_gen: v5e
topology: v5e:2x2
jax: 0.10.0
libtpu: 0.0.40
codegen_flags: <defaults>
</compile_context>

<pallas_src>
import math
import functools

import jax
import jax.numpy as jnp
from jax.experimental import pallas as pl
from jax.experimental.pallas import tpu as pltpu


# ------------------------- fused Pallas kernel -------------------------

def _cross_attention_fused_kernel(x_ref, y_ref, wq_ref, bq_ref, wkv_ref,
                                  bkv_ref, wo_ref, bo_ref, o_ref, *, n_pieces):
    f32 = jnp.float32
    bf16 = jnp.bfloat16
    Bb, Sq, E = x_ref.shape
    _, Skv, Dc = y_ref.shape

    # ---- projections: batch block flattened into the matmul M dimension ----
    # bf16 MXU operands, f32 accumulation.  Weights arrive already bf16.
    x2 = x_ref[...].reshape(Bb * Sq, E).astype(bf16)
    y2 = y_ref[...].reshape(Bb * Skv, Dc).astype(bf16)

    # 1/sqrt(d_head) is pre-folded into wq/bq in the wrapper.
    q = jnp.dot(x2, wq_ref[...], preferred_element_type=f32) + bq_ref[...]
    kv = jnp.dot(y2, wkv_ref[...], preferred_element_type=f32) + bkv_ref[...]

    q = q.reshape(Bb, Sq, E).astype(bf16)
    k = kv[:, :E].reshape(Bb, Skv, E).astype(bf16)
    v = kv[:, E:].reshape(Bb, Skv, E).astype(bf16)   # column-permuted V if n_pieces > 0

    # ---- attention on full E (no head split -- matches the PyTorch forward) ----
    s = jnp.einsum('bqd,bkd->bqk', q, k, preferred_element_type=f32)   # (Bb,Sq,Skv)
    m = jnp.max(s, axis=-1, keepdims=True)
    p = jnp.exp(s - m)
    l = jnp.sum(p, axis=-1, keepdims=True)
    o = jnp.einsum('bqk,bkd->bqd', p.astype(bf16), v, preferred_element_type=f32)
    o = (o * pl.reciprocal(l, approx=True)).astype(bf16)   # denom on EUP, then bf16

    # ---- transpose(1,2).contiguous().view scramble + out_proj (one full-K dot) ----
    ot = jnp.swapaxes(o, 1, 2)                              # (Bb, E, Sq)
    if n_pieces > 0:
        # E % Sq == 0: V columns were pre-permuted in the wrapper so the scrambled
        # matrix is exactly the contiguous (Bb,Sq,Sq) slices of `ot`, concatenated
        # along the K axis -> single full-depth matmul against wo.
        scrambled = jnp.concatenate(
            [ot[:, r * Sq:(r + 1) * Sq, :].reshape(Bb * Sq, Sq)
             for r in range(n_pieces)], axis=-1)            # (Bb*Sq, E)
    else:
        # TODO(synk): general E % Sq != 0 path uses a lane-changing reshape
        # (correct, but lowers to a VMEM relayout copy).
        scrambled = ot.reshape(Bb * Sq, E)

    out2 = jnp.dot(scrambled, wo_ref[...], preferred_element_type=f32) + bo_ref[...]
    o_ref[...] = out2.reshape(Bb, Sq, E).astype(o_ref.dtype)


# ------------------------- sizing helpers -------------------------

def _vmem_capacity_bytes():
    try:
        return int(pltpu.get_tpu_info().vmem_capacity_bytes)
    except Exception:
        return 64 * 1024 * 1024        # conservative default (v7x per-core VMEM)


def _choose_block_and_vmem(B, Sq, Skv, E, Dc, vmem_bytes):
    """Largest batch block whose working set fits an explicit VMEM byte budget,
    plus a matching scoped-VMEM limit."""
    # Resident weights: bf16 matrices + f32 biases (x1.5 slack for tiling padding).
    weight_bytes = 1.5 * (2 * (E * E + Dc * 2 * E + E * E) + 4 * (4 * E))
    # Per-sample bytes: double-buffered x/y/out blocks (f32) + f32 intermediates
    # (q, kv, scores, probs, o, result) + bf16 casts (q, k, v, p, o, scrambled).
    per_sample = (
        2 * 4 * (Sq * E + Skv * Dc + Sq * E)
        + 4 * (2 * Sq * E + 2 * Skv * E + 2 * Sq * Skv + 2 * Sq * E)
        + 2 * (2 * Sq * E + 2 * Skv * E + Sq * Skv + 2 * Sq * E)
    )
    budget = 0.7 * vmem_bytes - weight_bytes
    cap = max(1, int(budget // max(per_sample, 1)))
    if B >= 2:
        cap = min(cap, B // 2)         # >=2 grid steps so v7x's two TCs both get work
    cap = min(cap, max(1, 2048 // max(Sq, 1)))   # amortize ~0.35us/step overhead
    block_b = 1
    for cand in range(1, B + 1):
        if B % cand == 0 and cand <= cap:
            block_b = cand
    est = weight_bytes + block_b * per_sample
    vmem_limit = int(min(0.9 * vmem_bytes, max(2.0 * est, 32 * 1024 * 1024)))
    return block_b, vmem_limit


# ------------------------- wrapper -------------------------

def cross_attention_pallas(x, y, params, n_heads, *, block_b=None):
    B, Sq, E = x.shape
    By, Skv, Dc = y.shape
    assert By == B
    d_head = E // n_heads
    inv_sqrt_d_head = 1.0 / math.sqrt(d_head)

    f32, bf16 = jnp.float32, jnp.bfloat16

    # ---- one-time weight prep (host/XLA side) ----
    # Fold the 1/sqrt(d_head) score scale into the Q projection.
    wq = params["wq"].astype(f32) * inv_sqrt_d_head
    bq = params["bq"].astype(f32) * inv_sqrt_d_head
    wo = params["wo"].astype(f32)
    bo = params["bo"].astype(f32)
    wk, bk = params["wk"].astype(f32), params["bk"].astype(f32)
    wv, bv = params["wv"].astype(f32), params["bv"].astype(f32)

    # If E is a multiple of Sq, pre-permute the V-projection columns so the
    # in-kernel transpose(1,2).view scramble reduces to contiguous slices.
    n_pieces = (E // Sq) if (E % Sq == 0) else 0
    if n_pieces:
        j = jnp.arange(E)
        perm = (j % Sq) * n_pieces + (j // Sq)
        wv = wv[:, perm]
        bv = bv[perm]

    wkv = jnp.concatenate([wk, wv], axis=1)                     # (Dc, 2E)
    bkv = jnp.concatenate([bk, bv], axis=0).reshape(1, 2 * E)   # (1, 2E) f32
    bq = bq.reshape(1, E)
    bo = bo.reshape(1, E)

    # bf16 weights in HBM (half the DMA bytes, bf16 MXU operands); biases stay f32.
    wq, wkv, wo = wq.astype(bf16), wkv.astype(bf16), wo.astype(bf16)

    vmem_bytes = _vmem_capacity_bytes()
    auto_block_b, vmem_limit = _choose_block_and_vmem(B, Sq, Skv, E, Dc, vmem_bytes)
    if block_b is None:
        block_b = auto_block_b
    assert B % block_b == 0
    grid_b = B // block_b

    kernel = functools.partial(_cross_attention_fused_kernel, n_pieces=n_pieces)

    def build(use_weight_buffering):
        def wspec(shape):
            kwargs = {}
            if use_weight_buffering:
                # Grid-invariant: fetched once, no double buffer -> frees VMEM.
                kwargs["pipeline_mode"] = pl.Buffered(1)
            return pl.BlockSpec(shape, lambda b: (0, 0), **kwargs)

        return pl.pallas_call(
            kernel,
            out_shape=jax.ShapeDtypeStruct((B, Sq, E), x.dtype),
            grid_spec=pltpu.PrefetchScalarGridSpec(
                num_scalar_prefetch=0,
                grid=(grid_b,),
                in_specs=[
                    pl.BlockSpec((block_b, Sq, E), lambda b: (b, 0, 0)),     # x
                    pl.BlockSpec((block_b, Skv, Dc), lambda b: (b, 0, 0)),   # y
                    wspec((E, E)),          # wq (scaled, bf16)
                    wspec((1, E)),          # bq (scaled, f32)
                    wspec((Dc, 2 * E)),     # wkv (bf16)
                    wspec((1, 2 * E)),      # bkv (f32)
                    wspec((E, E)),          # wo (bf16)
                    wspec((1, E)),          # bo (f32)
                ],
                out_specs=pl.BlockSpec((block_b, Sq, E), lambda b: (b, 0, 0)),
            ),
            compiler_params=pltpu.CompilerParams(
                dimension_semantics=("parallel",),
                vmem_limit_bytes=vmem_limit,
            ),
        )

    args = (x, y, wq, bq, wkv, bkv, wo, bo)
    try:
        return build(True)(*args)
    except Exception:
        # TODO(synk): fall back when pipeline_mode=pl.Buffered(1) (single-buffered
        # grid-invariant weights) is not supported by this jax/Mosaic version.
        return build(False)(*args)


# ------------------------- pure-JAX reference -------------------------

def cross_attention_ref(x, y, params, n_heads):
    B, Sq, E = x.shape
    d_head = E // n_heads
    q = x @ params["wq"] + params["bq"]
    k = y @ params["wk"] + params["bk"]
    v = y @ params["wv"] + params["bv"]
    w = (q @ jnp.swapaxes(k, 1, 2)) / math.sqrt(d_head)
    w = jax.nn.softmax(w, axis=-1)
    o = w @ v
    o = jnp.reshape(jnp.swapaxes(o, 1, 2), (B, Sq, E))
    return o @ params["wo"] + params["bo"]


# ------------------------- params / main -------------------------

def init_params(key, d_embed, d_cross):
    """PyTorch-Linear-style deterministic init: U(-1/sqrt(fan_in), 1/sqrt(fan_in))."""
    ks = jax.random.split(key, 8)

    def lin(kw, kb, fan_in, fan_out):
        bound = 1.0 / math.sqrt(fan_in)
        w = jax.random.uniform(kw, (fan_in, fan_out), jnp.float32, -bound, bound)
        b = jax.random.uniform(kb, (fan_out,), jnp.float32, -bound, bound)
        return w, b

    wq, bq = lin(ks[0], ks[1], d_embed, d_embed)
    wk, bk = lin(ks[2], ks[3], d_cross, d_embed)
    wv, bv = lin(ks[4], ks[5], d_cross, d_embed)
    wo, bo = lin(ks[6], ks[7], d_embed, d_embed)
    return dict(wq=wq, bq=bq, wk=wk, bk=bk, wv=wv, bv=bv, wo=wo, bo=bo)


if __name__ == "__main__":
    B, Sq, Skv = 2, 8, 8
    d_embed, d_cross, n_heads = 32, 16, 4

    key = jax.random.PRNGKey(0)
    kx, ky, kp = jax.random.split(key, 3)
    x = jax.random.normal(kx, (B, Sq, d_embed), jnp.float32)
    y = jax.random.normal(ky, (B, Skv, d_cross), jnp.float32)
    params = init_params(kp, d_embed, d_cross)

    out = cross_attention_pallas(x, y, params, n_heads)
    out = jax.block_until_ready(out)

    ref = cross_attention_ref(x, y, params, n_heads)
    assert out.shape == (B, Sq, d_embed)
    # bf16 MXU operands (f32 accumulation) + approx reciprocal -> loosened tolerance
    # vs. the all-f32 reference.
    assert jnp.allclose(out, ref, atol=3e-2, rtol=3e-2), "mismatch vs reference"

    print("KERNEL_OK")
</pallas_src>

<mosaic_0001>
module attributes {stable_mosaic.version = 11 : i64} {
  func.func @_cross_attention_fused_kernel(%arg0: i32, %arg1: memref<1x8x32xf32, #tpu.memory_space<vmem>>, %arg2: memref<1x8x16xf32, #tpu.memory_space<vmem>>, %arg3: memref<32x32xbf16, #tpu.memory_space<vmem>>, %arg4: memref<1x32xf32, #tpu.memory_space<vmem>>, %arg5: memref<16x64xbf16, #tpu.memory_space<vmem>>, %arg6: memref<1x64xf32, #tpu.memory_space<vmem>>, %arg7: memref<32x32xbf16, #tpu.memory_space<vmem>>, %arg8: memref<1x32xf32, #tpu.memory_space<vmem>>, %arg9: memref<1x8x32xf32, #tpu.memory_space<vmem>>) attributes {dimension_semantics = [#tpu.dimension_semantics<parallel>], iteration_bounds = array<i64: 2>, scalar_prefetch = 0 : i64, scratch_operands = 0 : i64, tpu.core_type = #tpu.core_type<tc>, window_params = [{transform_indices = @transform_0, window_bounds = array<i64: 1, 8, 32>}, {transform_indices = @transform_1, window_bounds = array<i64: 1, 8, 16>}, {pipeline_mode = #tpu.pipeline_mode<synchronous>, transform_indices = @transform_2, window_bounds = array<i64: 32, 32>}, {pipeline_mode = #tpu.pipeline_mode<synchronous>, transform_indices = @transform_3, window_bounds = array<i64: 1, 32>}, {pipeline_mode = #tpu.pipeline_mode<synchronous>, transform_indices = @transform_4, window_bounds = array<i64: 16, 64>}, {pipeline_mode = #tpu.pipeline_mode<synchronous>, transform_indices = @transform_5, window_bounds = array<i64: 1, 64>}, {pipeline_mode = #tpu.pipeline_mode<synchronous>, transform_indices = @transform_6, window_bounds = array<i64: 32, 32>}, {pipeline_mode = #tpu.pipeline_mode<synchronous>, transform_indices = @transform_7, window_bounds = array<i64: 1, 32>}, {transform_indices = @transform_8, window_bounds = array<i64: 1, 8, 32>}]} {
    %c0 = arith.constant 0 : index
    %c0_0 = arith.constant 0 : index
    %c0_1 = arith.constant 0 : index
    %0 = vector.load %arg1[%c0, %c0_0, %c0_1] : memref<1x8x32xf32, #tpu.memory_space<vmem>>, vector<1x8x32xf32>
    %1 = vector.shape_cast %0 : vector<1x8x32xf32> to vector<8x32xf32>
    %2 = arith.truncf %1 : vector<8x32xf32> to vector<8x32xbf16>
    %c0_2 = arith.constant 0 : index
    %c0_3 = arith.constant 0 : index
    %c0_4 = arith.constant 0 : index
    %3 = vector.load %arg2[%c0_2, %c0_3, %c0_4] : memref<1x8x16xf32, #tpu.memory_space<vmem>>, vector<1x8x16xf32>
    %4 = vector.shape_cast %3 : vector<1x8x16xf32> to vector<8x16xf32>
    %5 = arith.truncf %4 : vector<8x16xf32> to vector<8x16xbf16>
    %c0_5 = arith.constant 0 : index
    %c0_6 = arith.constant 0 : index
    %6 = vector.load %arg3[%c0_5, %c0_6] : memref<32x32xbf16, #tpu.memory_space<vmem>>, vector<32x32xbf16>
    %cst = arith.constant dense<0.000000e+00> : vector<8x32xf32>
    %7 = tpu.matmul %2, %6, %cst {dimension_numbers = #tpu.dot_dimension_numbers<[1], [0], [0], [1], [0, 0, 1, 1], [], []>} : vector<8x32xbf16>, vector<32x32xbf16>, vector<8x32xf32> -> vector<8x32xf32>
    %c0_7 = arith.constant 0 : index
    %c0_8 = arith.constant 0 : index
    %8 = vector.load %arg4[%c0_7, %c0_8] : memref<1x32xf32, #tpu.memory_space<vmem>>, vector<1x32xf32>
    %9 = vector.broadcast %8 : vector<1x32xf32> to vector<8x32xf32>
    %10 = arith.addf %7, %9 : vector<8x32xf32>
    %c0_9 = arith.constant 0 : index
    %c0_10 = arith.constant 0 : index
    %11 = vector.load %arg5[%c0_9, %c0_10] : memref<16x64xbf16, #tpu.memory_space<vmem>>, vector<16x64xbf16>
    %cst_11 = arith.constant dense<0.000000e+00> : vector<8x64xf32>
    %12 = tpu.matmul %5, %11, %cst_11 {dimension_numbers = #tpu.dot_dimension_numbers<[1], [0], [0], [1], [0, 0, 1, 1], [], []>} : vector<8x16xbf16>, vector<16x64xbf16>, vector<8x64xf32> -> vector<8x64xf32>
    %c0_12 = arith.constant 0 : index
    %c0_13 = arith.constant 0 : index
    %13 = vector.load %arg6[%c0_12, %c0_13] : memref<1x64xf32, #tpu.memory_space<vmem>>, vector<1x64xf32>
    %14 = vector.broadcast %13 : vector<1x64xf32> to vector<8x64xf32>
    %15 = arith.addf %12, %14 : vector<8x64xf32>
    %16 = vector.shape_cast %10 : vector<8x32xf32> to vector<1x8x32xf32>
    %17 = arith.truncf %16 : vector<1x8x32xf32> to vector<1x8x32xbf16>
    %18 = vector.extract_strided_slice %15 {offsets = [0, 0], sizes = [8, 32], strides = [1, 1]} : vector<8x64xf32> to vector<8x32xf32>
    %19 = vector.shape_cast %18 : vector<8x32xf32> to vector<1x8x32xf32>
    %20 = arith.truncf %19 : vector<1x8x32xf32> to vector<1x8x32xbf16>
    %21 = vector.extract_strided_slice %15 {offsets = [0, 32], sizes = [8, 32], strides = [1, 1]} : vector<8x64xf32> to vector<8x32xf32>
    %22 = vector.shape_cast %21 : vector<8x32xf32> to vector<1x8x32xf32>
    %23 = arith.truncf %22 : vector<1x8x32xf32> to vector<1x8x32xbf16>
    "tpu.trace_start"() <{level = 10 : i32, message = "bqd,bkd->bqk"}> : () -> ()
    %cst_14 = arith.constant dense<0.000000e+00> : vector<1x8x8xf32>
    %24 = tpu.matmul %17, %20, %cst_14 {dimension_numbers = #tpu.dot_dimension_numbers<[2], [2], [1], [1], [0, 0, 0, 1, 1, 1], [0], [0]>} : vector<1x8x32xbf16>, vector<1x8x32xbf16>, vector<1x8x8xf32> -> vector<1x8x8xf32>
    "tpu.trace_stop"() : () -> ()
    %cst_15 = arith.constant dense<0xFF800000> : vector<1x8xf32>
    %25 = vector.multi_reduction <maximumf>, %24, %cst_15 [2] : vector<1x8x8xf32> to vector<1x8xf32>
    %26 = vector.shape_cast %25 : vector<1x8xf32> to vector<1x8x1xf32>
    %27 = vector.broadcast %26 : vector<1x8x1xf32> to vector<1x8x8xf32>
    %28 = arith.subf %24, %27 : vector<1x8x8xf32>
    %29 = math.exp %28 : vector<1x8x8xf32>
    %cst_16 = arith.constant dense<0.000000e+00> : vector<1x8xf32>
    %30 = vector.multi_reduction <add>, %29, %cst_16 [2] : vector<1x8x8xf32> to vector<1x8xf32>
    %31 = vector.shape_cast %30 : vector<1x8xf32> to vector<1x8x1xf32>
    %32 = arith.truncf %29 : vector<1x8x8xf32> to vector<1x8x8xbf16>
    "tpu.trace_start"() <{level = 10 : i32, message = "bqk,bkd->bqd"}> : () -> ()
    %cst_17 = arith.constant dense<0.000000e+00> : vector<1x8x32xf32>
    %33 = tpu.matmul %32, %23, %cst_17 {dimension_numbers = #tpu.dot_dimension_numbers<[2], [1], [1], [2], [0, 0, 0, 1, 1, 2], [0], [0]>} : vector<1x8x8xbf16>, vector<1x8x32xbf16>, vector<1x8x32xf32> -> vector<1x8x32xf32>
    "tpu.trace_stop"() : () -> ()
    %34 = tpu.reciprocal %31 {approx = true} : vector<1x8x1xf32> -> vector<1x8x1xf32>
    %35 = vector.broadcast %34 : vector<1x8x1xf32> to vector<1x8x32xf32>
    %36 = arith.mulf %33, %35 : vector<1x8x32xf32>
    %37 = arith.truncf %36 : vector<1x8x32xf32> to vector<1x8x32xbf16>
    %38 = tpu.transpose %37, [0, 2, 1] : vector<1x8x32xbf16> -> vector<1x32x8xbf16>
    %39 = vector.extract_strided_slice %38 {offsets = [0, 0, 0], sizes = [1, 8, 8], strides = [1, 1, 1]} : vector<1x32x8xbf16> to vector<1x8x8xbf16>
    %40 = vector.shape_cast %39 : vector<1x8x8xbf16> to vector<8x8xbf16>
    %41 = vector.extract_strided_slice %38 {offsets = [0, 8, 0], sizes = [1, 8, 8], strides = [1, 1, 1]} : vector<1x32x8xbf16> to vector<1x8x8xbf16>
    %42 = vector.shape_cast %41 : vector<1x8x8xbf16> to vector<8x8xbf16>
    %43 = vector.extract_strided_slice %38 {offsets = [0, 16, 0], sizes = [1, 8, 8], strides = [1, 1, 1]} : vector<1x32x8xbf16> to vector<1x8x8xbf16>
    %44 = vector.shape_cast %43 : vector<1x8x8xbf16> to vector<8x8xbf16>
    %45 = vector.extract_strided_slice %38 {offsets = [0, 24, 0], sizes = [1, 8, 8], strides = [1, 1, 1]} : vector<1x32x8xbf16> to vector<1x8x8xbf16>
    %46 = vector.shape_cast %45 : vector<1x8x8xbf16> to vector<8x8xbf16>
    %47 = tpu.concatenate %40, %42, %44, %46 in 1 : vector<8x8xbf16>, vector<8x8xbf16>, vector<8x8xbf16>, vector<8x8xbf16> -> vector<8x32xbf16>
    %c0_18 = arith.constant 0 : index
    %c0_19 = arith.constant 0 : index
    %48 = vector.load %arg7[%c0_18, %c0_19] : memref<32x32xbf16, #tpu.memory_space<vmem>>, vector<32x32xbf16>
    %cst_20 = arith.constant dense<0.000000e+00> : vector<8x32xf32>
    %49 = tpu.matmul %47, %48, %cst_20 {dimension_numbers = #tpu.dot_dimension_numbers<[1], [0], [0], [1], [0, 0, 1, 1], [], []>} : vector<8x32xbf16>, vector<32x32xbf16>, vector<8x32xf32> -> vector<8x32xf32>
    %c0_21 = arith.constant 0 : index
    %c0_22 = arith.constant 0 : index
    %50 = vector.load %arg8[%c0_21, %c0_22] : memref<1x32xf32, #tpu.memory_space<vmem>>, vector<1x32xf32>
    %51 = vector.broadcast %50 : vector<1x32xf32> to vector<8x32xf32>
    %52 = arith.addf %49, %51 : vector<8x32xf32>
    %53 = vector.shape_cast %52 : vector<8x32xf32> to vector<1x8x32xf32>
    %c0_23 = arith.constant 0 : index
    %c0_24 = arith.constant 0 : index
    %c0_25 = arith.constant 0 : index
    %54 = vector.load %arg9[%c0_23, %c0_24, %c0_25] : memref<1x8x32xf32, #tpu.memory_space<vmem>>, vector<1x8x32xf32>
    tpu.vector_store %arg9[%c0_23, %c0_24, %c0_25], %53 {strides = array<i32>} : memref<1x8x32xf32, #tpu.memory_space<vmem>>, vector<1x8x32xf32>,
    return
  }
  func.func @transform_0(%arg0: i32) -> (i32, i32, i32) {
    %c0_i32 = arith.constant 0 : i32
    %c0_i32_0 = arith.constant 0 : i32
    %c0_i32_1 = arith.constant 0 : i32
    return %arg0, %c0_i32, %c0_i32_0 : i32, i32, i32
  }
  func.func @transform_1(%arg0: i32) -> (i32, i32, i32) {
    %c0_i32 = arith.constant 0 : i32
    %c0_i32_0 = arith.constant 0 : i32
    %c0_i32_1 = arith.constant 0 : i32
    return %arg0, %c0_i32, %c0_i32_0 : i32, i32, i32
  }
  func.func @transform_2(%arg0: i32) -> (i32, i32) {
    %c0_i32 = arith.constant 0 : i32
    %c0_i32_0 = arith.constant 0 : i32
    %c0_i32_1 = arith.constant 0 : i32
    return %c0_i32, %c0_i32_0 : i32, i32
  }
  func.func @transform_3(%arg0: i32) -> (i32, i32) {
    %c0_i32 = arith.constant 0 : i32
    %c0_i32_0 = arith.constant 0 : i32
    %c0_i32_1 = arith.constant 0 : i32
    return %c0_i32, %c0_i32_0 : i32, i32
  }
  func.func @transform_4(%arg0: i32) -> (i32, i32) {
    %c0_i32 = arith.constant 0 : i32
    %c0_i32_0 = arith.constant 0 : i32
    %c0_i32_1 = arith.constant 0 : i32
    return %c0_i32, %c0_i32_0 : i32, i32
  }
  func.func @transform_5(%arg0: i32) -> (i32, i32) {
    %c0_i32 = arith.constant 0 : i32
    %c0_i32_0 = arith.constant 0 : i32
    %c0_i32_1 = arith.constant 0 : i32
    return %c0_i32, %c0_i32_0 : i32, i32
  }
  func.func @transform_6(%arg0: i32) -> (i32, i32) {
    %c0_i32 = arith.constant 0 : i32
    %c0_i32_0 = arith.constant 0 : i32
    %c0_i32_1 = arith.constant 0 : i32
    return %c0_i32, %c0_i32_0 : i32, i32
  }
  func.func @transform_7(%arg0: i32) -> (i32, i32) {
    %c0_i32 = arith.constant 0 : i32
    %c0_i32_0 = arith.constant 0 : i32
    %c0_i32_1 = arith.constant 0 : i32
    return %c0_i32, %c0_i32_0 : i32, i32
  }
  func.func @transform_8(%arg0: i32) -> (i32, i32, i32) {
    %c0_i32 = arith.constant 0 : i32
    %c0_i32_0 = arith.constant 0 : i32
    %c0_i32_1 = arith.constant 0 : i32
    return %arg0, %c0_i32, %c0_i32_0 : i32, i32, i32
  }
}

module attributes {stable_mosaic.version = 11 : i64} {
  func.func @_cross_attention_fused_kernel(%arg0: i32, %arg1: memref<1x8x32xf32, #tpu.memory_space<vmem>>, %arg2: memref<1x8x16xf32, #tpu.memory_space<vmem>>, %arg3: memref<32x32xbf16, #tpu.memory_space<vmem>>, %arg4: memref<1x32xf32, #tpu.memory_space<vmem>>, %arg5: memref<16x64xbf16, #tpu.memory_space<vmem>>, %arg6: memref<1x64xf32, #tpu.memory_space<vmem>>, %arg7: memref<32x32xbf16, #tpu.memory_space<vmem>>, %arg8: memref<1x32xf32, #tpu.memory_space<vmem>>, %arg9: memref<1x8x32xf32, #tpu.memory_space<vmem>>) attributes {dimension_semantics = [#tpu.dimension_semantics<parallel>], iteration_bounds = array<i64: 2>, scalar_prefetch = 0 : i64, scratch_operands = 0 : i64, tpu.core_type = #tpu.core_type<tc>, window_params = [{transform_indices = @transform_0, window_bounds = array<i64: 1, 8, 32>}, {transform_indices = @transform_1, window_bounds = array<i64: 1, 8, 16>}, {pipeline_mode = #tpu.pipeline_mode<synchronous>, transform_indices = @transform_2, window_bounds = array<i64: 32, 32>}, {pipeline_mode = #tpu.pipeline_mode<synchronous>, transform_indices = @transform_3, window_bounds = array<i64: 1, 32>}, {pipeline_mode = #tpu.pipeline_mode<synchronous>, transform_indices = @transform_4, window_bounds = array<i64: 16, 64>}, {pipeline_mode = #tpu.pipeline_mode<synchronous>, transform_indices = @transform_5, window_bounds = array<i64: 1, 64>}, {pipeline_mode = #tpu.pipeline_mode<synchronous>, transform_indices = @transform_6, window_bounds = array<i64: 32, 32>}, {pipeline_mode = #tpu.pipeline_mode<synchronous>, transform_indices = @transform_7, window_bounds = array<i64: 1, 32>}, {transform_indices = @transform_8, window_bounds = array<i64: 1, 8, 32>}]} {
    %c0 = arith.constant 0 : index
    %c0_0 = arith.constant 0 : index
    %c0_1 = arith.constant 0 : index
    %0 = vector.load %arg1[%c0, %c0_0, %c0_1] : memref<1x8x32xf32, #tpu.memory_space<vmem>>, vector<1x8x32xf32>
    %1 = vector.shape_cast %0 : vector<1x8x32xf32> to vector<8x32xf32>
    %2 = arith.truncf %1 : vector<8x32xf32> to vector<8x32xbf16>
    %c0_2 = arith.constant 0 : index
    %c0_3 = arith.constant 0 : index
    %c0_4 = arith.constant 0 : index
    %3 = vector.load %arg2[%c0_2, %c0_3, %c0_4] : memref<1x8x16xf32, #tpu.memory_space<vmem>>, vector<1x8x16xf32>
    %4 = vector.shape_cast %3 : vector<1x8x16xf32> to vector<8x16xf32>
    %5 = arith.truncf %4 : vector<8x16xf32> to vector<8x16xbf16>
    %c0_5 = arith.constant 0 : index
    %c0_6 = arith.constant 0 : index
    %6 = vector.load %arg3[%c0_5, %c0_6] : memref<32x32xbf16, #tpu.memory_space<vmem>>, vector<32x32xbf16>
    %cst = arith.constant dense<0.000000e+00> : vector<8x32xf32>
    %7 = tpu.matmul %2, %6, %cst {dimension_numbers = #tpu.dot_dimension_numbers<[1], [0], [0], [1], [0, 0, 1, 1], [], []>} : vector<8x32xbf16>, vector<32x32xbf16>, vector<8x32xf32> -> vector<8x32xf32>
    %c0_7 = arith.constant 0 : index
    %c0_8 = arith.constant 0 : index
    %8 = vector.load %arg4[%c0_7, %c0_8] : memref<1x32xf32, #tpu.memory_space<vmem>>, vector<1x32xf32>
    %9 = vector.broadcast %8 : vector<1x32xf32> to vector<8x32xf32>
    %10 = arith.addf %7, %9 : vector<8x32xf32>
    %c0_9 = arith.constant 0 : index
    %c0_10 = arith.constant 0 : index
    %11 = vector.load %arg5[%c0_9, %c0_10] : memref<16x64xbf16, #tpu.memory_space<vmem>>, vector<16x64xbf16>
    %cst_11 = arith.constant dense<0.000000e+00> : vector<8x64xf32>
    %12 = tpu.matmul %5, %11, %cst_11 {dimension_numbers = #tpu.dot_dimension_numbers<[1], [0], [0], [1], [0, 0, 1, 1], [], []>} : vector<8x16xbf16>, vector<16x64xbf16>, vector<8x64xf32> -> vector<8x64xf32>
    %c0_12 = arith.constant 0 : index
    %c0_13 = arith.constant 0 : index
    %13 = vector.load %arg6[%c0_12, %c0_13] : memref<1x64xf32, #tpu.memory_space<vmem>>, vector<1x64xf32>
    %14 = vector.broadcast %13 : vector<1x64xf32> to vector<8x64xf32>
    %15 = arith.addf %12, %14 : vector<8x64xf32>
    %16 = vector.shape_cast %10 : vector<8x32xf32> to vector<1x8x32xf32>
    %17 = arith.truncf %16 : vector<1x8x32xf32> to vector<1x8x32xbf16>
    %18 = vector.extract_strided_slice %15 {offsets = [0, 0], sizes = [8, 32], strides = [1, 1]} : vector<8x64xf32> to vector<8x32xf32>
    %19 = vector.shape_cast %18 : vector<8x32xf32> to vector<1x8x32xf32>
    %20 = arith.truncf %19 : vector<1x8x32xf32> to vector<1x8x32xbf16>
    %21 = vector.extract_strided_slice %15 {offsets = [0, 32], sizes = [8, 32], strides = [1, 1]} : vector<8x64xf32> to vector<8x32xf32>
    %22 = vector.shape_cast %21 : vector<8x32xf32> to vector<1x8x32xf32>
    %23 = arith.truncf %22 : vector<1x8x32xf32> to vector<1x8x32xbf16>
    "tpu.trace_start"() <{level = 10 : i32, message = "bqd,bkd->bqk"}> : () -> ()
    %cst_14 = arith.constant dense<0.000000e+00> : vector<1x8x8xf32>
    %24 = tpu.matmul %17, %20, %cst_14 {dimension_numbers = #tpu.dot_dimension_numbers<[2], [2], [1], [1], [0, 0, 0, 1, 1, 1], [0], [0]>} : vector<1x8x32xbf16>, vector<1x8x32xbf16>, vector<1x8x8xf32> -> vector<1x8x8xf32>
    "tpu.trace_stop"() : () -> ()
    %cst_15 = arith.constant dense<0xFF800000> : vector<1x8xf32>
    %25 = vector.multi_reduction <maximumf>, %24, %cst_15 [2] : vector<1x8x8xf32> to vector<1x8xf32>
    %26 = vector.shape_cast %25 : vector<1x8xf32> to vector<1x8x1xf32>
    %27 = vector.broadcast %26 : vector<1x8x1xf32> to vector<1x8x8xf32>
    %28 = arith.subf %24, %27 : vector<1x8x8xf32>
    %29 = math.exp %28 : vector<1x8x8xf32>
    %cst_16 = arith.constant dense<0.000000e+00> : vector<1x8xf32>
    %30 = vector.multi_reduction <add>, %29, %cst_16 [2] : vector<1x8x8xf32> to vector<1x8xf32>
    %31 = vector.shape_cast %30 : vector<1x8xf32> to vector<1x8x1xf32>
    %32 = arith.truncf %29 : vector<1x8x8xf32> to vector<1x8x8xbf16>
    "tpu.trace_start"() <{level = 10 : i32, message = "bqk,bkd->bqd"}> : () -> ()
    %cst_17 = arith.constant dense<0.000000e+00> : vector<1x8x32xf32>
    %33 = tpu.matmul %32, %23, %cst_17 {dimension_numbers = #tpu.dot_dimension_numbers<[2], [1], [1], [2], [0, 0, 0, 1, 1, 2], [0], [0]>} : vector<1x8x8xbf16>, vector<1x8x32xbf16>, vector<1x8x32xf32> -> vector<1x8x32xf32>
    "tpu.trace_stop"() : () -> ()
    %34 = tpu.reciprocal %31 {approx = true} : vector<1x8x1xf32> -> vector<1x8x1xf32>
    %35 = vector.broadcast %34 : vector<1x8x1xf32> to vector<1x8x32xf32>
    %36 = arith.mulf %33, %35 : vector<1x8x32xf32>
    %37 = arith.truncf %36 : vector<1x8x32xf32> to vector<1x8x32xbf16>
    %38 = tpu.transpose %37, [0, 2, 1] : vector<1x8x32xbf16> -> vector<1x32x8xbf16>
    %39 = vector.extract_strided_slice %38 {offsets = [0, 0, 0], sizes = [1, 8, 8], strides = [1, 1, 1]} : vector<1x32x8xbf16> to vector<1x8x8xbf16>
    %40 = vector.shape_cast %39 : vector<1x8x8xbf16> to vector<8x8xbf16>
    %41 = vector.extract_strided_slice %38 {offsets = [0, 8, 0], sizes = [1, 8, 8], strides = [1, 1, 1]} : vector<1x32x8xbf16> to vector<1x8x8xbf16>
    %42 = vector.shape_cast %41 : vector<1x8x8xbf16> to vector<8x8xbf16>
    %43 = vector.extract_strided_slice %38 {offsets = [0, 16, 0], sizes = [1, 8, 8], strides = [1, 1, 1]} : vector<1x32x8xbf16> to vector<1x8x8xbf16>
    %44 = vector.shape_cast %43 : vector<1x8x8xbf16> to vector<8x8xbf16>
    %45 = vector.extract_strided_slice %38 {offsets = [0, 24, 0], sizes = [1, 8, 8], strides = [1, 1, 1]} : vector<1x32x8xbf16> to vector<1x8x8xbf16>
    %46 = vector.shape_cast %45 : vector<1x8x8xbf16> to vector<8x8xbf16>
    %47 = tpu.concatenate %40, %42, %44, %46 in 1 : vector<8x8xbf16>, vector<8x8xbf16>, vector<8x8xbf16>, vector<8x8xbf16> -> vector<8x32xbf16>
    %c0_18 = arith.constant 0 : index
    %c0_19 = arith.constant 0 : index
    %48 = vector.load %arg7[%c0_18, %c0_19] : memref<32x32xbf16, #tpu.memory_space<vmem>>, vector<32x32xbf16>
    %cst_20 = arith.constant dense<0.000000e+00> : vector<8x32xf32>
    %49 = tpu.matmul %47, %48, %cst_20 {dimension_numbers = #tpu.dot_dimension_numbers<[1], [0], [0], [1], [0, 0, 1, 1], [], []>} : vector<8x32xbf16>, vector<32x32xbf16>, vector<8x32xf32> -> vector<8x32xf32>
    %c0_21 = arith.constant 0 : index
    %c0_22 = arith.constant 0 : index
    %50 = vector.load %arg8[%c0_21, %c0_22] : memref<1x32xf32, #tpu.memory_space<vmem>>, vector<1x32xf32>
    %51 = vector.broadcast %50 : vector<1x32xf32> to vector<8x32xf32>
    %52 = arith.addf %49, %51 : vector<8x32xf32>
    %53 = vector.shape_cast %52 : vector<8x32xf32> to vector<1x8x32xf32>
    %c0_23 = arith.constant 0 : index
    %c0_24 = arith.constant 0 : index
    %c0_25 = arith.constant 0 : index
    %54 = vector.load %arg9[%c0_23, %c0_24, %c0_25] : memref<1x8x32xf32, #tpu.memory_space<vmem>>, vector<1x8x32xf32>
    tpu.vector_store %arg9[%c0_23, %c0_24, %c0_25], %53 {strides = array<i32>} : memref<1x8x32xf32, #tpu.memory_space<vmem>>, vector<1x8x32xf32>,
    return
  }
  func.func @transform_0(%arg0: i32) -> (i32, i32, i32) {
    %c0_i32 = arith.constant 0 : i32
    %c0_i32_0 = arith.constant 0 : i32
    %c0_i32_1 = arith.constant 0 : i32
    return %arg0, %c0_i32, %c0_i32_0 : i32, i32, i32
  }
  func.func @transform_1(%arg0: i32) -> (i32, i32, i32) {
    %c0_i32 = arith.constant 0 : i32
    %c0_i32_0 = arith.constant 0 : i32
    %c0_i32_1 = arith.constant 0 : i32
    return %arg0, %c0_i32, %c0_i32_0 : i32, i32, i32
  }
  func.func @transform_2(%arg0: i32) -> (i32, i32) {
    %c0_i32 = arith.constant 0 : i32
    %c0_i32_0 = arith.constant 0 : i32
    %c0_i32_1 = arith.constant 0 : i32
    return %c0_i32, %c0_i32_0 : i32, i32
  }
  func.func @transform_3(%arg0: i32) -> (i32, i32) {
    %c0_i32 = arith.constant 0 : i32
    %c0_i32_0 = arith.constant 0 : i32
    %c0_i32_1 = arith.constant 0 : i32
    return %c0_i32, %c0_i32_0 : i32, i32
  }
  func.func @transform_4(%arg0: i32) -> (i32, i32) {
    %c0_i32 = arith.constant 0 : i32
    %c0_i32_0 = arith.constant 0 : i32
    %c0_i32_1 = arith.constant 0 : i32
    return %c0_i32, %c0_i32_0 : i32, i32
  }
  func.func @transform_5(%arg0: i32) -> (i32, i32) {
    %c0_i32 = arith.constant 0 : i32
    %c0_i32_0 = arith.constant 0 : i32
    %c0_i32_1 = arith.constant 0 : i32
    return %c0_i32, %c0_i32_0 : i32, i32
  }
  func.func @transform_6(%arg0: i32) -> (i32, i32) {
    %c0_i32 = arith.constant 0 : i32
    %c0_i32_0 = arith.constant 0 : i32
    %c0_i32_1 = arith.constant 0 : i32
    return %c0_i32, %c0_i32_0 : i32, i32
  }
  func.func @transform_7(%arg0: i32) -> (i32, i32) {
    %c0_i32 = arith.constant 0 : i32
    %c0_i32_0 = arith.constant 0 : i32
    %c0_i32_1 = arith.constant 0 : i32
    return %c0_i32, %c0_i32_0 : i32, i32
  }
  func.func @transform_8(%arg0: i32) -> (i32, i32, i32) {
    %c0_i32 = arith.constant 0 : i32
    %c0_i32_0 = arith.constant 0 : i32
    %c0_i32_1 = arith.constant 0 : i32
    return %arg0, %c0_i32, %c0_i32_0 : i32, i32, i32
  }
}

</mosaic_0001>

<bundles_post_ra>
// kernel: tpu_custom_call.1
= control target key start
LH: loop header
LB: loop body
LE: loop exit
PB: predicated region body
PF: predicated region fallthrough
CT: control target
= control target key end

     0   :  { %s1390_s0 = inlined_call_operand.hbm [shape: f32[2,8,32], index: 0, kind: input, shape index: {}]   ;;  %s1391_s1 = inlined_call_operand.hbm [shape: f32[2,8,16], index: 1, kind: input, shape index: {}]   ;;  %s1392_s2 = inlined_call_operand.hbm [shape: bf16[32,32], index: 2, kind: input, shape index: {}]   ;;  %s1393_s3 = inlined_call_operand.vmem [shape: f32[1,32], index: 3, kind: input, shape index: {}]   ;;  %s1394_s4 = inlined_call_operand.hbm [shape: bf16[16,64], index: 4, kind: input, shape index: {}]   ;;  %s1395_s5 = inlined_call_operand.vmem [shape: f32[1,64], index: 5, kind: input, shape index: {}]   ;;  %s1396_s6 = inlined_call_operand.hbm [shape: bf16[32,32], index: 6, kind: input, shape index: {}]   ;;  %s1397_s7 = inlined_call_operand.vmem [shape: f32[1,32], index: 7, kind: input, shape index: {}]   ;;  %s1398_s8 = inlined_call_operand.hbm [shape: f32[2,8,32], index: 8, kind: output, shape index: {}]  }
   0x1   :  { %1403 = sst [smem:[#allocation21_spill]] %s1392_s2 }
   0x2   :  { %1404 = sst [smem:[#allocation22_spill]] %s1394_s4 }
   0x3   :  { %1405 = sst [smem:[#allocation23_spill]] %s1396_s6 }
   0x4   :  { %13 = vsyncpa [#allocation3], 0 }
   0x5   :  { %15 = vsyncpa [#allocation3 + $0x1], 0 }
   0x6   :  { %16 = vsyncpa [#allocation6], 0 }
   0x7   :  { %18 = vsyncpa [#allocation6 + $0x1], 0 }
   0x8   :  { %19 = vsyncpa [#allocation9], 0 }
   0x9   :  { %20 = vsyncpa [#allocation4], 0 }
   0xa   :  { %22 = vsyncpa [#allocation4 + $0x1], 0  ;;  %s1180_s27 = smov 0   ;;  %s1182_s28 = smov 0  }
   0xb   :  { %s1184_s29 = smov 0   ;;  %s1186_s30 = smov 0  }
   0xc LB: > { %1406 = sst [smem:[#allocation17_spill]] %s1120_s29  ;;  %s1204_s12 = sadd.s32 4294967295, %s1124_s30   ;;  %s1124_s30 = sphi %s1186_s30, %s1422_s30   ;;  %s1120_s29 = sphi %s1184_s29, %s1424_s29   ;;  %s1116_s28 = sphi %s1182_s28, %s1426_s28   ;;  %s1112_s27 = sphi %s1180_s27, %s1425_s27  }
   0xd   : > { %1407 = sst [smem:[#allocation18_spill]] %s1124_s30  ;;  %p750_p0 = scmp.ge.s32.totalorder %s1124_s30, 1 }
   0xe   : > { %s1408_s2 = sld [smem:[#allocation21_spill]]  ;;  %p49_p1 = scmp.eq.s32.totalorder %s1204_s12, 0 }
   0xf   : > { %p237_p2 = scmp.lt.s32.totalorder %s1124_s30, 3  ;;  %s1126_s14 = smov [#allocation7]  }
  0x10   : > { %s250_s15 = sshll.u32 %s1126_s14, 4  ;;  %s1410_s4 = sld [smem:[#allocation22_spill]]  ;;  %s251_s15 = int_to_ptr.vmem [resolvable:$true] %s250_s15 }
  0x11   : > { %p1209_p3 = pnand %p750_p0, %p237_p2  ;;  %s1412_s6 = sld [smem:[#allocation23_spill]] }
  0x12   : > { %s1127_s23 = smov [#allocation8]   ;;  %s1128_s25 = smov 64  }
  0x13   : > { %p818_p4 = pneg %p1209_p3  ;;  %s267_s24 = sshll.u32 %s1127_s23, 4  ;;  %s268_s24 = int_to_ptr.vmem [resolvable:$true] %s267_s24 }
  0x14   : > { %s248_s11 = sshll.u32 %s1408_s2, 4  ;;  %s1129_s26 = smov 4   ;;  %s249_s11 = int_to_ptr.hbm [resolvable:$true] %s248_s11 }
  0x15   : > { %p1221_p6 = pnand %p818_p4, %p49_p1  ;;  %s1130_s9 = smov [#allocation10]  }
  0x16   : > { %s265_s18 = sshll.u32 %s1410_s4, 4  ;;  %s284_s10 = sshll.u32 %s1130_s9, 4  ;;  %s266_s18 = int_to_ptr.hbm [resolvable:$true] %s265_s18  ;;  %s285_s10 = int_to_ptr.vmem [resolvable:$true] %s284_s10 }
  0x17   : > { %s282_s22 = sshll.u32 %s1412_s6, 4  ;;  %s749_s14 = sadd.s32 4294967294, %s1124_s30   ;;  %s283_s22 = int_to_ptr.hbm [resolvable:$true] %s282_s22 }
  0x18   : > { %821 = dma.hbm_to_vmem [thread:$0]  (!%p1221_p6), %s249_s11, 256, %s251_s15, [#allocation6], %s1128_s25, %s1128_s25, %s1129_s26  }
  0x19   : > { %824 = dma.hbm_to_vmem [thread:$0]  (!%p1221_p6), %s266_s18, 128, %s268_s24, [#allocation9], %s1128_s25, %s1128_s25, %s1129_s26  }
  0x1a   : > { %827 = dma.hbm_to_vmem [thread:$0]  (!%p1221_p6), %s283_s22, 256, %s285_s10, [#allocation9], %s1128_s25, %s1128_s25, %s1129_s26  }
  0x1b   : > { %s1236_s16 = sadd.s32 1, %s1124_s30   ;;  %s35_s17 = sadd.s32 1, %s1120_s29 }
  0x1c   : > { %1413 = sst [smem:[#allocation19_spill]] %s1236_s16  ;;  %s32_s11 = ssub.s32 %s1124_s30, %s1236_s16 }
  0x1d   : > { %p42_p7 = scmp.ne.s32.totalorder %s1120_s29, %s1116_s28  ;;  %p33_p8 = scmp.eq.s32.totalorder %s32_s11, 0 }
  0x1e   : > { %p43_p9 = scmp.eq.s32.totalorder %s1124_s30, 0  ;;  %p48_p10 = scmp.ne.s32.totalorder %s1116_s28, %s1112_s27 }
  0x1f   : > { %p224_p11 = scmp.eq.s32.totalorder %s1204_s12, 1  ;;  %p230_p2 = scmp.eq.s32.totalorder %s749_s14, 1 }
  0x20   : > { %s1248_s15 = scalar_select %p33_p8, %s1120_s29, %s35_s17  }
  0x21   : > { %p1250_p12 = por %p43_p9, %p42_p7  ;;  %p1256_p13 = por %p49_p1, %p48_p10 }
  0x22   : > { %1414 = sst [smem:[#allocation20_spill]] %s1248_s15  ;;  %p1260_p0 = por %p224_p11, %p42_p7 }
  0x23   : > { %p842_p4 = scmp.lt.s32.totalorder %s1124_s30, 2  ;;  %s301_s21 = sand.u32 1, %s1120_s29  }
  0x24   : > { %p1266_p6 = por %p230_p2, %p48_p10  ;;  %s755_s23 = sshll.u32 %s301_s21, 3 }
  0x25   : > { %s756_s24 = sshll.u32 %s1124_s30, 3  ;;  %s305_s17 = scalar_lea.vmem [#allocation2], %s755_s23 }
  0x26   : > { %s309_s9 = scalar_lea.hbm %s1390_s0, %s756_s24  ;;  %s313_s11 = sshll.u32 %s305_s17, 4  ;;  %s314_s11 = int_to_ptr.vmem [resolvable:$true] %s313_s11 }
  0x27   : > { %s311_s10 = sshll.u32 %s309_s9, 4  ;;  %p1276_p7 = pnand %p842_p4, %p1250_p12  ;;  %s312_s10 = int_to_ptr.hbm [resolvable:$true] %s311_s10 }
  0x28   : > { %s328_s6 = scalar_lea.hbm %s1391_s1, %s756_s24  ;;  %s320_s15 = sand.u32 1, %s1124_s30  }
  0x29   : > { %s302_s29 = scalar_lea.sflag [#allocation3], %s301_s21  ;;  %s986_s25 = sshra.s32 %s312_s10, 4  ;;  %s987_s25 = int_to_ptr.hbm [resolvable:$true] %s986_s25 }
  0x2a   : > { %s988_s26 = scalar_lea.hbm %s987_s25, 8  ;;  %p990_p9 = pneg %p1276_p7 }
  0x2b   : > { %p989_p8 = scmp.ne.s32.totalorder %s987_s25, %s988_s26  ;;  %s993_s17 = scalar_lea.hbm %s1390_s0, 16 }
  0x2c   : > { %p994_p12 = scmp.lt.s32.totalorder %s987_s25, %s1390_s0  ;;  %p995_p2 = scmp.lt.s32.totalorder %s993_s17, %s988_s26 }
  0x2d   : > { %p991_p10 = pnand %p990_p9, %p989_p8 }
  0x2e   : > { %p996_p4 = por %p995_p2, %p994_p12 }
  0x2f   : > { %p992_p11 = pneg %p991_p10 }
  0x31   : > { %p997_p5 = pnand %p996_p4, %p992_p11 }
  0x33   : > { %1000 = shalt.err (!%p997_p5)
}
  0x34   : > { %831 = dma.hbm_to_vmem [thread:$0]  (!%p1276_p7), %s312_s10, 128, %s314_s11, %s302_s29  }
  0x35   : > { %s330_s21 = sshll.u32 %s328_s6, 4  ;;  %s324_s24 = scalar_lea.vmem [#allocation5], %s755_s23  ;;  %s331_s21 = int_to_ptr.hbm [resolvable:$true] %s330_s21 }
  0x36   : > { %s332_s16 = sshll.u32 %s324_s24, 4  ;;  %s321_s30 = scalar_lea.sflag [#allocation6], %s320_s15  ;;  %s333_s16 = int_to_ptr.vmem [resolvable:$true] %s332_s16 }
  0x37   : > { %s1016_s18 = sshra.s32 %s331_s21, 4  ;;  %s1023_s17 = scalar_lea.hbm %s1391_s1, 16  ;;  %s1017_s18 = int_to_ptr.hbm [resolvable:$true] %s1016_s18 }
  0x38   : > { %s1018_s9 = scalar_lea.hbm %s1017_s18, 8  ;;  %p1024_p5 = scmp.lt.s32.totalorder %s1017_s18, %s1391_s1 }
  0x39   : > { %p1019_p8 = scmp.ne.s32.totalorder %s1017_s18, %s1018_s9  ;;  %p1025_p11 = scmp.lt.s32.totalorder %s1023_s17, %s1018_s9 }
  0x3b   : > { %p1021_p10 = pnand %p1019_p8, %p990_p9  ;;  %p1026_p2 = por %p1025_p11, %p1024_p5 }
  0x3d   : > { %p1022_p12 = pneg %p1021_p10 }
  0x3f   : > { %p1027_p4 = pnand %p1026_p2, %p1022_p12 }
  0x41   : > { %1030 = shalt.err (!%p1027_p4)
}
  0x42   : > { %834 = dma.hbm_to_vmem [thread:$0]  (!%p1276_p7), %s331_s21, 128, %s333_s16, %s321_s30  }
  0x43   : > { %341 = sbr.rel (%p1209_p3) target bundleno = 1053 (0x41d), region = 52  ;;  %s1311_s6 = sand.u32 (!%p1209_p3), 1, %s1116_s28  }
  0x44   : > { %s1314_s15 = sshll.u32 (!%p1209_p3), %s1311_s6, 3  ;;  %s344_s23 = scalar_lea.sflag (!%p1209_p3), [#allocation3], %s1311_s6 }
  0x45   : > { %s347_s10 = scalar_lea.vmem (!%p1209_p3), [#allocation2], %s1314_s15 }
  0x48   : > { %1091 = dma.done.wait (%p1256_p13), %s344_s23, 128  }
  0x49   : > { %1093 = vsyncadd (%p1256_p13), %s344_s23, 4294967168  ;;  %s353_s30 = sand.u32 1, %s1204_s12   ;;  %s357_s16 = scalar_lea.vmem [#allocation5], %s1314_s15 }
  0x4a   : > { %s354_s13 = scalar_lea.sflag [#allocation6], %s353_s30 }
  0x4b   : > { %1095 = dma.done.wait (%p1256_p13), %s354_s13, 128  }
  0x4c   : > { %1097 = vsyncadd (%p1256_p13), %s354_s13, 4294967168 }
  0x4d   : > { %1099 = dma.done.wait (%p49_p1), [#allocation6], 256  }
  0x4e   : > { %1101 = vsyncadd (%p49_p1), [#allocation6], 4294967040 }
  0x4f   : > { %1103 = dma.done.wait (%p49_p1), [#allocation9], 384  }
  0x50   : > { %1105 = vsyncadd (%p49_p1), [#allocation9], 4294966912  ;;  %v796_v0 = vld [vmem:[#allocation7 + $0x8] sm:$0xff]  ;;  %v797_v1 = vld [vmem:[#allocation8] sm:$0xff]  ;;  %vm465_vm0 = vcmask 130048   ;;  %vm436_vm1 = vcmask 261120  }
  0x51   : > { %v414_v2 = vld [vmem:[%s357_s16] sm:$0xff]  ;;  %v795_v4 = vld [vmem:[#allocation7] sm:$0xff]  ;;  %446 = vmatpush.bf16.msra.mxu0 %v796_v0  ;;  %476 = vmatpush.bf16.msra.mxu1 %v797_v1  ;;  %vm503_vm2 = vcmask 64512   ;;  %s1131_s21 = smov 96   ;;  %vm522_vm3 = vcmask 1043456   ;;  %s1132_s24 = smov 8  }
  0x52   : > { %v415_v3 = vpack.c.bf16 %v414_v2, %v414_v2  ;;  %v412_v5 = vld [vmem:[%s347_s10] sm:$0xff]  ;;  %s1133_s18 = smov 16   ;;  %s1134_s9 = smov 24   ;;  %v798_v42 = vld [vmem:[#allocation10] sm:$0xff]  ;;  %vm573_vm4 = vcmask 195584  }
  0x53   : > { %v413_v6 = vpack.c.bf16 %v412_v5, %v412_v5  ;;  %v889_v7 = vld [vmem:[%s1395_s5] ss:$0 sm:$0xff]  ;;  %s792_s25 = sshll.u32 %s1204_s12, 3  ;;  %s410_s10 = scalar_lea.vmem [#allocation11], %s1314_s15 }
  0x54   : > { %779 = vmatmul.msk.bf16.vlgmr.msra.gmra.mxu1 %vm465_vm0, %v415_v3  ;;  %v890_v10 = vld [vmem:[%s1393_s3] ss:$0 sm:$0xff]  ;;  %s623_s2 = scalar_lea.hbm %s1398_s8, %s792_s25  ;;  %s625_s30 = sshll.u32 %s410_s10, 4  ;;  %s626_s30 = int_to_ptr.vmem [resolvable:$true] %s625_s30 }
  0x55   : > { %447 = vmatpush.bf16.msra.mxu0 %v795_v4  ;;  %v799_v41 = vld [vmem:[#allocation10 + $0x8] sm:$0xff]  ;;  %s627_s13 = sshll.u32 %s623_s2, 4  ;;  %s613_s16 = scalar_lea.sflag [#allocation4], %s1311_s6  ;;  %s628_s13 = int_to_ptr.hbm [resolvable:$true] %s627_s13 }
  0x56   : > { %604 = vmatpush.bf16.msrb.mxu1 %v799_v41  ;;  %v891_v49 = vld [vmem:[%s1397_s7] ss:$0 sm:$0xff]  ;;  %s1060_s12 = sshra.s32 %s628_s13, 4  ;;  %s1066_s15 = scalar_lea.hbm %s1398_s8, 16  ;;  %s1061_s12 = int_to_ptr.hbm [resolvable:$true] %s1060_s12 }
  0x57   : > { %s1062_s19 = scalar_lea.hbm %s1061_s12, 8  ;;  %p1067_p7 = scmp.lt.s32.totalorder %s1061_s12, %s1398_s8 }
  0x58   : > { %774 = vmatmul.msk.bf16.vlgmr.msra.gmra.mxu0 %vm436_vm1, %v413_v6  ;;  %p1063_p1 = scmp.ne.s32.totalorder %s1061_s12, %s1062_s19  ;;  %p1068_p9 = scmp.lt.s32.totalorder %s1066_s15, %s1062_s19 }
  0x5a   : > { %605 = vmatpush.bf16.msrb.mxu1 %v798_v42  ;;  %p1064_p3 = pnand %p1063_p1, %p1260_p0  ;;  %p1069_p8 = por %p1068_p9, %p1067_p7 }
  0x5c   : > { %p1065_p13 = pneg %p1064_p3 }
  0x5e   : > { %p1070_p10 = pnand %p1069_p8, %p1065_p13 }
  0xd1   : > { %v478_v8 = vpop.f32.mrf.mxu1 }
  0xd2   : > { %v479_v9 = vadd.f32 %v889_v7, %v478_v8 }
  0xd4   : > { %v483_v11 = vpack.c.bf16 %v479_v9, %v479_v9 }
  0xd5   : > { %v449_v12 = vpop.f32.mrf.mxu0 }
  0xd6   : > { %v450_v13 = vadd.f32 %v890_v10, %v449_v12  ;;  %v488_v14 = vsel %vm436_vm1, %v483_v11, 0  ;;  %v515_v21 = vunpack.c.l.b16 %v483_v11 }
  0xd7   : > { %497 = vmatpush.bf16.xpose.msra.mxu2 %v488_v14 }
  0xd8   : > { %v482_v16 = vpack.c.bf16 %v450_v13, %v450_v13  ;;  %v516_v22 = vpack.c.b16 %v515_v21, %v515_v21 }
  0xd9   : > { %v480_v15 = vpop.f32.mrf.mxu1 }
  0xdd   : > { %v451_v17 = vpop.f32.mrf.mxu0 }
  0xde   : > { %780 = vmatmul.msk.bf16.vlgmr.msra.gmra.mxu2 %vm436_vm1, %v482_v16 }
 0x161   : > { %v499_v18 = vpop.f32.mrf.mxu2 }
 0x162   : > { %v504_v19 = vsel %vm503_vm2, %v499_v18, -inf }
 0x163   : > { %505 = vmax.xlane.f32.xlu0 %v504_v19 }
 0x169   : > { %v501_v20 = vpop.f32.mrf.mxu2 }
 0x177   : > { %517 = vrot.lane.b32.xlu0 %v516_v22, %s1131_s21 }
 0x1d6   : > { %v506_v23 = vpop.xlane.xlu0 %505 }
 0x1d7   : > { %v507_v24 = vsub.f32 %v499_v18, %v506_v23 }
 0x1d9   : > { %v508_v25 = vmul.f32 1.442695, %v507_v24 }
 0x1db   : > { %892 = vpow2.f32 %v508_v25 }
 0x1e1   : > { %v893_v26 = vpop.eup %892 }
 0x1e2   : > { %v510_v27 = vsel %vm503_vm2, %v893_v26, 0.0  ;;  %v513_v30 = vpack.c.bf16 %v893_v26, %v893_v26 }
 0x1e3   : > { %511 = vadd.xlane.f32.xlu1 %v510_v27 }
 0x1e9   : > { %v518_v28 = vpop.permute.xlu0 %517 }
 0x1ea   : > { %v524_v29 = vsel %vm522_vm3, %v518_v28, 0 }
 0x1eb   : > { %533 = vmatpush.bf16.msra.mxu3 %v524_v29 }
 0x1ee   : > { %781 = vmatmul.msk.bf16.vlgmr.msra.gmra.mxu3 %vm503_vm2, %v513_v30 }
 0x256   : > { %v512_v31 = vpop.xlane.xlu1 %511 }
 0x257   : > { %894 = vrcp.f32 %v512_v31 }
 0x25d   : > { %v895_v32 = vpop.eup %894 }
 0x271   : > { %v535_v33 = vpop.f32.mrf.mxu3 }
 0x272   : > { %v540_v34 = vmul.f32 %v895_v32, %v535_v33 }
 0x274   : > { %v541_v35 = vpack.c.bf16 %v540_v34, %v540_v34 }
 0x276   : > { %542 = vxpose.xlu1.c.b16.start.end [1/1] (short) (narrow) %v541_v35, 32 }
 0x279   : > { %v537_v36 = vpop.f32.mrf.mxu3 }
 0x322   : > { %v550_v37 = vpop.trf.xlu1 }
 0x323   : > { %v559_v38 = vrot.slane %v550_v37, 4 }
 0x325   : > { %560 = vrot.lane.b32.xlu2 %v559_v38, %s1132_s24 }
 0x332   : > { %v551_v39 = vpop.trf.xlu1 }
 0x333   : > { %563 = vrot.lane.b32.xlu2 %v551_v39, %s1133_s18  ;;  %v565_v40 = vrot.slane %v551_v39, 4 }
 0x33b   : > { %566 = vrot.lane.b32.xlu2 %v565_v40, %s1134_s9 }
 0x37f   : > { %v561_v43 = vpop.permute.xlu2 %560 }
 0x380   : > { %v570_v45 = vsel %vm503_vm2, %v550_v37, %v561_v43 }
 0x38d   : > { %v564_v44 = vpop.permute.xlu2 %563 }
 0x38e   : > { %v572_v46 = vsel %vm465_vm0, %v570_v45, %v564_v44 }
 0x395   : > { %v567_v47 = vpop.permute.xlu2 %566 }
 0x396   : > { %v575_v48 = vsel %vm573_vm4, %v572_v46, %v567_v47 }
 0x397   : > { %790 = vmatmul.msk.bf16.vlgmr.msrb.gmra.mxu1 %vm436_vm1, %v575_v48 }
 0x414   : > { %v607_v50 = vpop.f32.mrf.mxu1 }
 0x415   : > { %v608_v51 = vadd.f32 %v891_v49, %v607_v50 }
 0x417   : > { %611 = vst.msk [vmem:[%s410_s10] sm:$0xff] %vm436_vm1, %v608_v51 }
 0x418   : > { %1073 = shalt.err (!%p1070_p10)
}
 0x419   : > { %816 = dma.vmem_to_hbm [thread:$0]  (%p1260_p0), %s626_s30, 128, %s628_s13, %s613_s16  }
 0x41c   : > { %v609_v52 = vpop.f32.mrf.mxu1 }
 0x41d PF: > { %s1420_s6 = sld [smem:[#allocation18_spill]]  ;;  %s639_s24 = sand.u32 1, %s1112_s27  }
 0x41e   : > { %s640_s18 = scalar_lea.sflag [#allocation4], %s639_s24 }
 0x423   : > { %p1421_p12 = scmp.ge.s32.totalorder %s1420_s6, 2 }
 0x425   : > { %p836_p5 = pnand %p1421_p12, %p1266_p6 }
 0x427   : > { %p837_p11 = pneg %p836_p5 }
 0x429   : > { %1107 = dma.done.wait (%p837_p11), %s640_s18, 128  }
 0x42a   : > { %1109 = vsyncadd (%p837_p11), %s640_s18, 4294967168  ;;  %s1422_s30 = sld [smem:[#allocation19_spill]]  ;;  %s1425_s27 = smov %s1116_s28 }
 0x42b   : > { %s1423_s9 = sld [smem:[#allocation17_spill]] }
 0x42c   : > { %s1424_s29 = sld [smem:[#allocation20_spill]] }
 0x430   : > { %p25_p2 = scmp.ge.s32.totalorder %s1422_s30, 4  }
 0x431   : > { %s1426_s28 = smov %s1423_s9 }
 0x432   :  { %27 = sbr.rel (!%p25_p2) target bundleno = 12 (0xc), region = 122 }
 0x437   :  { %646 = vsyncpa [#allocation3], 1 }
 0x438   :  { %648 = vsyncpa [#allocation3 + $0x1], 1 }
 0x439   :  { %649 = vsyncpa [#allocation6], 1 }
 0x43a   :  { %651 = vsyncpa [#allocation6 + $0x1], 1 }
 0x43b   :  { %652 = vsyncpa [#allocation9], 1 }
 0x43c   :  { %653 = vsyncpa [#allocation4], 1 }
 0x43d   :  { %655 = vsyncpa [#allocation4 + $0x1], 1 }

// kernel: tpu_custom_call.1
= control target key start
LH: loop header
LB: loop body
LE: loop exit
PB: predicated region body
PF: predicated region fallthrough
CT: control target
= control target key end

     0   :  { %s1390_s0 = inlined_call_operand.hbm [shape: f32[2,8,32], index: 0, kind: input, shape index: {}]   ;;  %s1391_s1 = inlined_call_operand.hbm [shape: f32[2,8,16], index: 1, kind: input, shape index: {}]   ;;  %s1392_s2 = inlined_call_operand.hbm [shape: bf16[32,32], index: 2, kind: input, shape index: {}]   ;;  %s1393_s3 = inlined_call_operand.vmem [shape: f32[1,32], index: 3, kind: input, shape index: {}]   ;;  %s1394_s4 = inlined_call_operand.hbm [shape: bf16[16,64], index: 4, kind: input, shape index: {}]   ;;  %s1395_s5 = inlined_call_operand.vmem [shape: f32[1,64], index: 5, kind: input, shape index: {}]   ;;  %s1396_s6 = inlined_call_operand.hbm [shape: bf16[32,32], index: 6, kind: input, shape index: {}]   ;;  %s1397_s7 = inlined_call_operand.vmem [shape: f32[1,32], index: 7, kind: input, shape index: {}]   ;;  %s1398_s8 = inlined_call_operand.hbm [shape: f32[2,8,32], index: 8, kind: output, shape index: {}]  }
   0x1   :  { %1403 = sst [smem:[#allocation21_spill]] %s1392_s2 }
   0x2   :  { %1404 = sst [smem:[#allocation22_spill]] %s1394_s4 }
   0x3   :  { %1405 = sst [smem:[#allocation23_spill]] %s1396_s6 }
   0x4   :  { %13 = vsyncpa [#allocation3], 0 }
   0x5   :  { %15 = vsyncpa [#allocation3 + $0x1], 0 }
   0x6   :  { %16 = vsyncpa [#allocation6], 0 }
   0x7   :  { %18 = vsyncpa [#allocation6 + $0x1], 0 }
   0x8   :  { %19 = vsyncpa [#allocation9], 0 }
   0x9   :  { %20 = vsyncpa [#allocation4], 0 }
   0xa   :  { %22 = vsyncpa [#allocation4 + $0x1], 0  ;;  %s1180_s27 = smov 0   ;;  %s1182_s28 = smov 0  }
   0xb   :  { %s1184_s29 = smov 0   ;;  %s1186_s30 = smov 0  }
   0xc LB: > { %1406 = sst [smem:[#allocation17_spill]] %s1120_s29  ;;  %s1204_s12 = sadd.s32 4294967295, %s1124_s30   ;;  %s1124_s30 = sphi %s1186_s30, %s1422_s30   ;;  %s1120_s29 = sphi %s1184_s29, %s1424_s29   ;;  %s1116_s28 = sphi %s1182_s28, %s1426_s28   ;;  %s1112_s27 = sphi %s1180_s27, %s1425_s27  }
   0xd   : > { %1407 = sst [smem:[#allocation18_spill]] %s1124_s30  ;;  %p750_p0 = scmp.ge.s32.totalorder %s1124_s30, 1 }
   0xe   : > { %s1408_s2 = sld [smem:[#allocation21_spill]]  ;;  %p49_p1 = scmp.eq.s32.totalorder %s1204_s12, 0 }
   0xf   : > { %p237_p2 = scmp.lt.s32.totalorder %s1124_s30, 3  ;;  %s1126_s14 = smov [#allocation7]  }
  0x10   : > { %s250_s15 = sshll.u32 %s1126_s14, 4  ;;  %s1410_s4 = sld [smem:[#allocation22_spill]]  ;;  %s251_s15 = int_to_ptr.vmem [resolvable:$true] %s250_s15 }
  0x11   : > { %p1209_p3 = pnand %p750_p0, %p237_p2  ;;  %s1412_s6 = sld [smem:[#allocation23_spill]] }
  0x12   : > { %s1127_s23 = smov [#allocation8]   ;;  %s1128_s25 = smov 64  }
  0x13   : > { %p818_p4 = pneg %p1209_p3  ;;  %s267_s24 = sshll.u32 %s1127_s23, 4  ;;  %s268_s24 = int_to_ptr.vmem [resolvable:$true] %s267_s24 }
  0x14   : > { %s248_s11 = sshll.u32 %s1408_s2, 4  ;;  %s1129_s26 = smov 4   ;;  %s249_s11 = int_to_ptr.hbm [resolvable:$true] %s248_s11 }
  0x15   : > { %p1221_p6 = pnand %p818_p4, %p49_p1  ;;  %s1130_s9 = smov [#allocation10]  }
  0x16   : > { %s265_s18 = sshll.u32 %s1410_s4, 4  ;;  %s284_s10 = sshll.u32 %s1130_s9, 4  ;;  %s266_s18 = int_to_ptr.hbm [resolvable:$true] %s265_s18  ;;  %s285_s10 = int_to_ptr.vmem [resolvable:$true] %s284_s10 }
  0x17   : > { %s282_s22 = sshll.u32 %s1412_s6, 4  ;;  %s749_s14 = sadd.s32 4294967294, %s1124_s30   ;;  %s283_s22 = int_to_ptr.hbm [resolvable:$true] %s282_s22 }
  0x18   : > { %821 = dma.hbm_to_vmem [thread:$0]  (!%p1221_p6), %s249_s11, 256, %s251_s15, [#allocation6], %s1128_s25, %s1128_s25, %s1129_s26  }
  0x19   : > { %824 = dma.hbm_to_vmem [thread:$0]  (!%p1221_p6), %s266_s18, 128, %s268_s24, [#allocation9], %s1128_s25, %s1128_s25, %s1129_s26  }
  0x1a   : > { %827 = dma.hbm_to_vmem [thread:$0]  (!%p1221_p6), %s283_s22, 256, %s285_s10, [#allocation9], %s1128_s25, %s1128_s25, %s1129_s26  }
  0x1b   : > { %s1236_s16 = sadd.s32 1, %s1124_s30   ;;  %s35_s17 = sadd.s32 1, %s1120_s29 }
  0x1c   : > { %1413 = sst [smem:[#allocation19_spill]] %s1236_s16  ;;  %s32_s11 = ssub.s32 %s1124_s30, %s1236_s16 }
  0x1d   : > { %p42_p7 = scmp.ne.s32.totalorder %s1120_s29, %s1116_s28  ;;  %p33_p8 = scmp.eq.s32.totalorder %s32_s11, 0 }
  0x1e   : > { %p43_p9 = scmp.eq.s32.totalorder %s1124_s30, 0  ;;  %p48_p10 = scmp.ne.s32.totalorder %s1116_s28, %s1112_s27 }
  0x1f   : > { %p224_p11 = scmp.eq.s32.totalorder %s1204_s12, 1  ;;  %p230_p2 = scmp.eq.s32.totalorder %s749_s14, 1 }
  0x20   : > { %s1248_s15 = scalar_select %p33_p8, %s1120_s29, %s35_s17  }
  0x21   : > { %p1250_p12 = por %p43_p9, %p42_p7  ;;  %p1256_p13 = por %p49_p1, %p48_p10 }
  0x22   : > { %1414 = sst [smem:[#allocation20_spill]] %s1248_s15  ;;  %p1260_p0 = por %p224_p11, %p42_p7 }
  0x23   : > { %p842_p4 = scmp.lt.s32.totalorder %s1124_s30, 2  ;;  %s301_s21 = sand.u32 1, %s1120_s29  }
  0x24   : > { %p1266_p6 = por %p230_p2, %p48_p10  ;;  %s755_s23 = sshll.u32 %s301_s21, 3 }
  0x25   : > { %s756_s24 = sshll.u32 %s1124_s30, 3  ;;  %s305_s17 = scalar_lea.vmem [#allocation2], %s755_s23 }
  0x26   : > { %s309_s9 = scalar_lea.hbm %s1390_s0, %s756_s24  ;;  %s313_s11 = sshll.u32 %s305_s17, 4  ;;  %s314_s11 = int_to_ptr.vmem [resolvable:$true] %s313_s11 }
  0x27   : > { %s311_s10 = sshll.u32 %s309_s9, 4  ;;  %p1276_p7 = pnand %p842_p4, %p1250_p12  ;;  %s312_s10 = int_to_ptr.hbm [resolvable:$true] %s311_s10 }
  0x28   : > { %s328_s6 = scalar_lea.hbm %s1391_s1, %s756_s24  ;;  %s320_s15 = sand.u32 1, %s1124_s30  }
  0x29   : > { %s302_s29 = scalar_lea.sflag [#allocation3], %s301_s21  ;;  %s986_s25 = sshra.s32 %s312_s10, 4  ;;  %s987_s25 = int_to_ptr.hbm [resolvable:$true] %s986_s25 }
  0x2a   : > { %s988_s26 = scalar_lea.hbm %s987_s25, 8  ;;  %p990_p9 = pneg %p1276_p7 }
  0x2b   : > { %p989_p8 = scmp.ne.s32.totalorder %s987_s25, %s988_s26  ;;  %s993_s17 = scalar_lea.hbm %s1390_s0, 16 }
  0x2c   : > { %p994_p12 = scmp.lt.s32.totalorder %s987_s25, %s1390_s0  ;;  %p995_p2 = scmp.lt.s32.totalorder %s993_s17, %s988_s26 }
  0x2d   : > { %p991_p10 = pnand %p990_p9, %p989_p8 }
  0x2e   : > { %p996_p4 = por %p995_p2, %p994_p12 }
  0x2f   : > { %p992_p11 = pneg %p991_p10 }
  0x31   : > { %p997_p5 = pnand %p996_p4, %p992_p11 }
  0x33   : > { %1000 = shalt.err (!%p997_p5)
}
  0x34   : > { %831 = dma.hbm_to_vmem [thread:$0]  (!%p1276_p7), %s312_s10, 128, %s314_s11, %s302_s29  }
  0x35   : > { %s330_s21 = sshll.u32 %s328_s6, 4  ;;  %s324_s24 = scalar_lea.vmem [#allocation5], %s755_s23  ;;  %s331_s21 = int_to_ptr.hbm [resolvable:$true] %s330_s21 }
  0x36   : > { %s332_s16 = sshll.u32 %s324_s24, 4  ;;  %s321_s30 = scalar_lea.sflag [#allocation6], %s320_s15  ;;  %s333_s16 = int_to_ptr.vmem [resolvable:$true] %s332_s16 }
  0x37   : > { %s1016_s18 = sshra.s32 %s331_s21, 4  ;;  %s1023_s17 = scalar_lea.hbm %s1391_s1, 16  ;;  %s1017_s18 = int_to_ptr.hbm [resolvable:$true] %s1016_s18 }
  0x38   : > { %s1018_s9 = scalar_lea.hbm %s1017_s18, 8  ;;  %p1024_p5 = scmp.lt.s32.totalorder %s1017_s18, %s1391_s1 }
  0x39   : > { %p1019_p8 = scmp.ne.s32.totalorder %s1017_s18, %s1018_s9  ;;  %p1025_p11 = scmp.lt.s32.totalorder %s1023_s17, %s1018_s9 }
  0x3b   : > { %p1021_p10 = pnand %p1019_p8, %p990_p9  ;;  %p1026_p2 = por %p1025_p11, %p1024_p5 }
  0x3d   : > { %p1022_p12 = pneg %p1021_p10 }
  0x3f   : > { %p1027_p4 = pnand %p1026_p2, %p1022_p12 }
  0x41   : > { %1030 = shalt.err (!%p1027_p4)
}
  0x42   : > { %834 = dma.hbm_to_vmem [thread:$0]  (!%p1276_p7), %s331_s21, 128, %s333_s16, %s321_s30  }
  0x43   : > { %341 = sbr.rel (%p1209_p3) target bundleno = 1053 (0x41d), region = 52  ;;  %s1311_s6 = sand.u32 (!%p1209_p3), 1, %s1116_s28  }
  0x44   : > { %s1314_s15 = sshll.u32 (!%p1209_p3), %s1311_s6, 3  ;;  %s344_s23 = scalar_lea.sflag (!%p1209_p3), [#allocation3], %s1311_s6 }
  0x45   : > { %s347_s10 = scalar_lea.vmem (!%p1209_p3), [#allocation2], %s1314_s15 }
  0x48   : > { %1091 = dma.done.wait (%p1256_p13), %s344_s23, 128  }
  0x49   : > { %1093 = vsyncadd (%p1256_p13), %s344_s23, 4294967168  ;;  %s353_s30 = sand.u32 1, %s1204_s12   ;;  %s357_s16 = scalar_lea.vmem [#allocation5], %s1314_s15 }
  0x4a   : > { %s354_s13 = scalar_lea.sflag [#allocation6], %s353_s30 }
  0x4b   : > { %1095 = dma.done.wait (%p1256_p13), %s354_s13, 128  }
  0x4c   : > { %1097 = vsyncadd (%p1256_p13), %s354_s13, 4294967168 }
  0x4d   : > { %1099 = dma.done.wait (%p49_p1), [#allocation6], 256  }
  0x4e   : > { %1101 = vsyncadd (%p49_p1), [#allocation6], 4294967040 }
  0x4f   : > { %1103 = dma.done.wait (%p49_p1), [#allocation9], 384  }
  0x50   : > { %1105 = vsyncadd (%p49_p1), [#allocation9], 4294966912  ;;  %v796_v0 = vld [vmem:[#allocation7 + $0x8] sm:$0xff]  ;;  %v797_v1 = vld [vmem:[#allocation8] sm:$0xff]  ;;  %vm465_vm0 = vcmask 130048   ;;  %vm436_vm1 = vcmask 261120  }
  0x51   : > { %v414_v2 = vld [vmem:[%s357_s16] sm:$0xff]  ;;  %v795_v4 = vld [vmem:[#allocation7] sm:$0xff]  ;;  %446 = vmatpush.bf16.msra.mxu0 %v796_v0  ;;  %476 = vmatpush.bf16.msra.mxu1 %v797_v1  ;;  %vm503_vm2 = vcmask 64512   ;;  %s1131_s21 = smov 96   ;;  %vm522_vm3 = vcmask 1043456   ;;  %s1132_s24 = smov 8  }
  0x52   : > { %v415_v3 = vpack.c.bf16 %v414_v2, %v414_v2  ;;  %v412_v5 = vld [vmem:[%s347_s10] sm:$0xff]  ;;  %s1133_s18 = smov 16   ;;  %s1134_s9 = smov 24   ;;  %v798_v42 = vld [vmem:[#allocation10] sm:$0xff]  ;;  %vm573_vm4 = vcmask 195584  }
  0x53   : > { %v413_v6 = vpack.c.bf16 %v412_v5, %v412_v5  ;;  %v889_v7 = vld [vmem:[%s1395_s5] ss:$0 sm:$0xff]  ;;  %s792_s25 = sshll.u32 %s1204_s12, 3  ;;  %s410_s10 = scalar_lea.vmem [#allocation11], %s1314_s15 }
  0x54   : > { %779 = vmatmul.msk.bf16.vlgmr.msra.gmra.mxu1 %vm465_vm0, %v415_v3  ;;  %v890_v10 = vld [vmem:[%s1393_s3] ss:$0 sm:$0xff]  ;;  %s623_s2 = scalar_lea.hbm %s1398_s8, %s792_s25  ;;  %s625_s30 = sshll.u32 %s410_s10, 4  ;;  %s626_s30 = int_to_ptr.vmem [resolvable:$true] %s625_s30 }
  0x55   : > { %447 = vmatpush.bf16.msra.mxu0 %v795_v4  ;;  %v799_v41 = vld [vmem:[#allocation10 + $0x8] sm:$0xff]  ;;  %s627_s13 = sshll.u32 %s623_s2, 4  ;;  %s613_s16 = scalar_lea.sflag [#allocation4], %s1311_s6  ;;  %s628_s13 = int_to_ptr.hbm [resolvable:$true] %s627_s13 }
  0x56   : > { %604 = vmatpush.bf16.msrb.mxu1 %v799_v41  ;;  %v891_v49 = vld [vmem:[%s1397_s7] ss:$0 sm:$0xff]  ;;  %s1060_s12 = sshra.s32 %s628_s13, 4  ;;  %s1066_s15 = scalar_lea.hbm %s1398_s8, 16  ;;  %s1061_s12 = int_to_ptr.hbm [resolvable:$true] %s1060_s12 }
  0x57   : > { %s1062_s19 = scalar_lea.hbm %s1061_s12, 8  ;;  %p1067_p7 = scmp.lt.s32.totalorder %s1061_s12, %s1398_s8 }
  0x58   : > { %774 = vmatmul.msk.bf16.vlgmr.msra.gmra.mxu0 %vm436_vm1, %v413_v6  ;;  %p1063_p1 = scmp.ne.s32.totalorder %s1061_s12, %s1062_s19  ;;  %p1068_p9 = scmp.lt.s32.totalorder %s1066_s15, %s1062_s19 }
  0x5a   : > { %605 = vmatpush.bf16.msrb.mxu1 %v798_v42  ;;  %p1064_p3 = pnand %p1063_p1, %p1260_p0  ;;  %p1069_p8 = por %p1068_p9, %p1067_p7 }
  0x5c   : > { %p1065_p13 = pneg %p1064_p3 }
  0x5e   : > { %p1070_p10 = pnand %p1069_p8, %p1065_p13 }
  0xd1   : > { %v478_v8 = vpop.f32.mrf.mxu1 }
  0xd2   : > { %v479_v9 = vadd.f32 %v889_v7, %v478_v8 }
  0xd4   : > { %v483_v11 = vpack.c.bf16 %v479_v9, %v479_v9 }
  0xd5   : > { %v449_v12 = vpop.f32.mrf.mxu0 }
  0xd6   : > { %v450_v13 = vadd.f32 %v890_v10, %v449_v12  ;;  %v488_v14 = vsel %vm436_vm1, %v483_v11, 0  ;;  %v515_v21 = vunpack.c.l.b16 %v483_v11 }
  0xd7   : > { %497 = vmatpush.bf16.xpose.msra.mxu2 %v488_v14 }
  0xd8   : > { %v482_v16 = vpack.c.bf16 %v450_v13, %v450_v13  ;;  %v516_v22 = vpack.c.b16 %v515_v21, %v515_v21 }
  0xd9   : > { %v480_v15 = vpop.f32.mrf.mxu1 }
  0xdd   : > { %v451_v17 = vpop.f32.mrf.mxu0 }
  0xde   : > { %780 = vmatmul.msk.bf16.vlgmr.msra.gmra.mxu2 %vm436_vm1, %v482_v16 }
 0x161   : > { %v499_v18 = vpop.f32.mrf.mxu2 }
 0x162   : > { %v504_v19 = vsel %vm503_vm2, %v499_v18, -inf }
 0x163   : > { %505 = vmax.xlane.f32.xlu0 %v504_v19 }
 0x169   : > { %v501_v20 = vpop.f32.mrf.mxu2 }
 0x177   : > { %517 = vrot.lane.b32.xlu0 %v516_v22, %s1131_s21 }
 0x1d6   : > { %v506_v23 = vpop.xlane.xlu0 %505 }
 0x1d7   : > { %v507_v24 = vsub.f32 %v499_v18, %v506_v23 }
 0x1d9   : > { %v508_v25 = vmul.f32 1.442695, %v507_v24 }
 0x1db   : > { %892 = vpow2.f32 %v508_v25 }
 0x1e1   : > { %v893_v26 = vpop.eup %892 }
 0x1e2   : > { %v510_v27 = vsel %vm503_vm2, %v893_v26, 0.0  ;;  %v513_v30 = vpack.c.bf16 %v893_v26, %v893_v26 }
 0x1e3   : > { %511 = vadd.xlane.f32.xlu1 %v510_v27 }
 0x1e9   : > { %v518_v28 = vpop.permute.xlu0 %517 }
 0x1ea   : > { %v524_v29 = vsel %vm522_vm3, %v518_v28, 0 }
 0x1eb   : > { %533 = vmatpush.bf16.msra.mxu3 %v524_v29 }
 0x1ee   : > { %781 = vmatmul.msk.bf16.vlgmr.msra.gmra.mxu3 %vm503_vm2, %v513_v30 }
 0x256   : > { %v512_v31 = vpop.xlane.xlu1 %511 }
 0x257   : > { %894 = vrcp.f32 %v512_v31 }
 0x25d   : > { %v895_v32 = vpop.eup %894 }
 0x271   : > { %v535_v33 = vpop.f32.mrf.mxu3 }
 0x272   : > { %v540_v34 = vmul.f32 %v895_v32, %v535_v33 }
 0x274   : > { %v541_v35 = vpack.c.bf16 %v540_v34, %v540_v34 }
 0x276   : > { %542 = vxpose.xlu1.c.b16.start.end [1/1] (short) (narrow) %v541_v35, 32 }
 0x279   : > { %v537_v36 = vpop.f32.mrf.mxu3 }
 0x322   : > { %v550_v37 = vpop.trf.xlu1 }
 0x323   : > { %v559_v38 = vrot.slane %v550_v37, 4 }
 0x325   : > { %560 = vrot.lane.b32.xlu2 %v559_v38, %s1132_s24 }
 0x332   : > { %v551_v39 = vpop.trf.xlu1 }
 0x333   : > { %563 = vrot.lane.b32.xlu2 %v551_v39, %s1133_s18  ;;  %v565_v40 = vrot.slane %v551_v39, 4 }
 0x33b   : > { %566 = vrot.lane.b32.xlu2 %v565_v40, %s1134_s9 }
 0x37f   : > { %v561_v43 = vpop.permute.xlu2 %560 }
 0x380   : > { %v570_v45 = vsel %vm503_vm2, %v550_v37, %v561_v43 }
 0x38d   : > { %v564_v44 = vpop.permute.xlu2 %563 }
 0x38e   : > { %v572_v46 = vsel %vm465_vm0, %v570_v45, %v564_v44 }
 0x395   : > { %v567_v47 = vpop.permute.xlu2 %566 }
 0x396   : > { %v575_v48 = vsel %vm573_vm4, %v572_v46, %v567_v47 }
 0x397   : > { %790 = vmatmul.msk.bf16.vlgmr.msrb.gmra.mxu1 %vm436_vm1, %v575_v48 }
 0x414   : > { %v607_v50 = vpop.f32.mrf.mxu1 }
 0x415   : > { %v608_v51 = vadd.f32 %v891_v49, %v607_v50 }
 0x417   : > { %611 = vst.msk [vmem:[%s410_s10] sm:$0xff] %vm436_vm1, %v608_v51 }
 0x418   : > { %1073 = shalt.err (!%p1070_p10)
}
 0x419   : > { %816 = dma.vmem_to_hbm [thread:$0]  (%p1260_p0), %s626_s30, 128, %s628_s13, %s613_s16  }
 0x41c   : > { %v609_v52 = vpop.f32.mrf.mxu1 }
 0x41d PF: > { %s1420_s6 = sld [smem:[#allocation18_spill]]  ;;  %s639_s24 = sand.u32 1, %s1112_s27  }
 0x41e   : > { %s640_s18 = scalar_lea.sflag [#allocation4], %s639_s24 }
 0x423   : > { %p1421_p12 = scmp.ge.s32.totalorder %s1420_s6, 2 }
 0x425   : > { %p836_p5 = pnand %p1421_p12, %p1266_p6 }
 0x427   : > { %p837_p11 = pneg %p836_p5 }
 0x429   : > { %1107 = dma.done.wait (%p837_p11), %s640_s18, 128  }
 0x42a   : > { %1109 = vsyncadd (%p837_p11), %s640_s18, 4294967168  ;;  %s1422_s30 = sld [smem:[#allocation19_spill]]  ;;  %s1425_s27 = smov %s1116_s28 }
 0x42b   : > { %s1423_s9 = sld [smem:[#allocation17_spill]] }
 0x42c   : > { %s1424_s29 = sld [smem:[#allocation20_spill]] }
 0x430   : > { %p25_p2 = scmp.ge.s32.totalorder %s1422_s30, 4  }
 0x431   : > { %s1426_s28 = smov %s1423_s9 }
 0x432   :  { %27 = sbr.rel (!%p25_p2) target bundleno = 12 (0xc), region = 122 }
 0x437   :  { %646 = vsyncpa [#allocation3], 1 }
 0x438   :  { %648 = vsyncpa [#allocation3 + $0x1], 1 }
 0x439   :  { %649 = vsyncpa [#allocation6], 1 }
 0x43a   :  { %651 = vsyncpa [#allocation6 + $0x1], 1 }
 0x43b   :  { %652 = vsyncpa [#allocation9], 1 }
 0x43c   :  { %653 = vsyncpa [#allocation4], 1 }
 0x43d   :  { %655 = vsyncpa [#allocation4 + $0x1], 1 }

</bundles_post_ra>
